<compile_context>
chip_gen: v5e
topology: v5e:2x2
jax: 0.10.0
libtpu: 0.0.40
codegen_flags: <defaults>
</compile_context>

<pallas_src>
import numpy as np
import jax
import jax.numpy as jnp
from jax.experimental import pallas as pl
from jax.experimental.pallas import tpu as pltpu


# Conservative double-buffered VMEM budget for the in+out blocks (the default
# scoped VMEM limit is 32 MiB on v5e/v6e/v7x; leave headroom).
_VMEM_BUDGET_BYTES = 24 * 1024 * 1024
# Minimum rows per grid step that is still worth a step (amortizes the
# ~600-cycle per-step overhead); also the threshold for forcing grid >= 2.
_MIN_SPLIT_ROWS = 2048


def time_encode_kernel(t_ref, w_ref, o_ref):
    # t_ref: (tile_n, 1), w_ref: (1, dim_out), o_ref: (tile_n, dim_out)
    # Outer product via broadcast (Linear(1 -> dim), no bias) in f32, cos on
    # the VPU, then a single cast on the store (narrows writeback for bf16).
    o_ref[...] = jnp.cos(t_ref[...] * w_ref[...]).astype(o_ref.dtype)


def _round_up(x, m):
    return ((x + m - 1) // m) * m


def _cdiv(a, b):
    return -(-a // b)


def time_encode(t, w, *, tile_n=8192, out_dtype=jnp.float32, pad_dim_to=None,
                min_pallas_n=2048):
    """Compute cos(t.reshape(-1,1) * w) on TPU via Pallas.

    t: arbitrary-shape float array; w: (dim,) frequency weights.
    Returns (N, dim) where N = t.size (or (N, pad_dim_to) if pad_dim_to is
    set; columns >= dim are cos(0)=1 and must be ignored by the caller, never
    reduced/normalized over).

    out_dtype=jnp.bfloat16 is the recommended model-use path (the op is ~100%
    HBM writeback; bf16 halves it).  The f32 default exists only for exact
    parity with the torch reference.
    """
    dim = int(w.shape[0])
    t_flat = t.reshape(-1).astype(jnp.float32)
    n = int(t_flat.shape[0])

    if pad_dim_to is not None:
        assert pad_dim_to >= dim
        w_row = jnp.pad(w.astype(jnp.float32), (0, int(pad_dim_to) - dim))
        dim_out = int(pad_dim_to)
    else:
        w_row = w.astype(jnp.float32)
        dim_out = dim

    # Small-N fallback: a single-step Pallas grid pays full launch + pipeline
    # warm-up for a few hundred KiB; XLA's fused elementwise is at parity or
    # faster there and it avoids the grid=(1,) megacore-idle case on v7x.
    if n < int(min_pallas_n):
        return jnp.cos(t_flat[:, None] * w_row[None, :]).astype(out_dtype)

    out_itemsize = jnp.dtype(out_dtype).itemsize
    # Sublane rule: second-minor block dim must be a multiple of 8 for 32-bit
    # output, 16 for bf16 (or equal the full array dim).  t is f32 (needs 8),
    # so align to the stricter of the two.
    align = 16 if out_itemsize < 4 else 8

    # VMEM accounting per row, double-buffered:
    #   t block (tile, 1) is lane-padded to (tile, 128) f32 in VMEM,
    #   out block (tile, dim_out) is lane-padded to a multiple of 128.
    bytes_per_row = 2 * (128 * 4 + _round_up(dim_out, 128) * out_itemsize)
    vmem_cap_rows = max(align, (_VMEM_BUDGET_BYTES // bytes_per_row) // align * align)

    tile = min(_round_up(max(int(tile_n), 1), align), vmem_cap_rows)
    # Megacore (v7x, 2 TCs): guarantee >= 2 grid steps when there is enough
    # work; irrelevant (but harmless) on v5e/v6e.
    if n >= 2 * _MIN_SPLIT_ROWS:
        tile = min(tile, _round_up(_cdiv(n, 2), align))
    # Never bigger than the (align-rounded) problem.
    tile = min(tile, _round_up(n, align))
    tile = max(align, tile)

    grid = (pl.cdiv(n, tile),)  # ragged tail handled by Pallas partial blocks

    t2 = t_flat.reshape(n, 1)
    w2 = w_row.reshape(1, dim_out)

    out = pl.pallas_call(
        time_encode_kernel,
        out_shape=jax.ShapeDtypeStruct((n, dim_out), out_dtype),
        grid_spec=pltpu.PrefetchScalarGridSpec(
            num_scalar_prefetch=0,
            grid=grid,
            in_specs=[
                pl.BlockSpec((tile, 1), lambda i: (i, 0)),
                pl.BlockSpec((1, dim_out), lambda i: (0, 0)),  # resident, re-DMA skipped
            ],
            out_specs=pl.BlockSpec((tile, dim_out), lambda i: (i, 0)),
        ),
        compiler_params=pltpu.CompilerParams(
            dimension_semantics=("parallel",),
        ),
    )(t2, w2)

    return out


def make_time_encode_weight(dim=100):
    # deterministic init, same as TimeEncode.reset_parameters
    return jnp.asarray(1.0 / 10 ** np.linspace(0, 9, dim, dtype=np.float64),
                       dtype=jnp.float32)


if __name__ == "__main__":
    dim = 100
    w = make_time_encode_weight(dim)
    key = jax.random.PRNGKey(0)
    k0, k1, k2 = jax.random.split(key, 3)

    # 1) Small deterministic input (batch=4, neighbors=8): force the Pallas
    #    path (min_pallas_n=0) for exact parity with the torch semantics.
    t = jax.random.uniform(k0, (4, 8), dtype=jnp.float32) * 1000.0
    out = jax.block_until_ready(time_encode(t, w, min_pallas_n=0))
    ref = jnp.cos(t.reshape(-1, 1) * w.reshape(1, dim))
    assert out.shape == (t.size, dim)
    np.testing.assert_allclose(np.asarray(out), np.asarray(ref), rtol=1e-5, atol=1e-5)

    # 2) Ragged-N path (exercises the partial last block; no pad+slice pass).
    t_ragged = jax.random.uniform(k1, (37,), dtype=jnp.float32) * 500.0
    out_r = jax.block_until_ready(time_encode(t_ragged, w, tile_n=16, min_pallas_n=0))
    ref_r = jnp.cos(t_ragged.reshape(-1, 1) * w.reshape(1, dim))
    assert out_r.shape == (37, dim)
    np.testing.assert_allclose(np.asarray(out_r), np.asarray(ref_r), rtol=1e-5, atol=1e-5)

    # 3) Large-N path with default tiling (grid >= 2, both v7x TCs busy).
    t_big = jax.random.uniform(k2, (20000,), dtype=jnp.float32) * 1000.0
    out_big = jax.block_until_ready(time_encode(t_big, w))
    ref_big = jnp.cos(t_big.reshape(-1, 1) * w.reshape(1, dim))
    assert out_big.shape == (20000, dim)
    np.testing.assert_allclose(np.asarray(out_big), np.asarray(ref_big),
                               rtol=1e-5, atol=1e-5)

    # 4) Recommended model-use path: bf16 output, lane-dense 128-wide features
    #    (padded columns are cos(0)=1 and must be ignored downstream).
    out_bf16 = jax.block_until_ready(
        time_encode(t_big, w, out_dtype=jnp.bfloat16, pad_dim_to=128))
    assert out_bf16.shape == (20000, 128)
    assert out_bf16.dtype == jnp.bfloat16
    np.testing.assert_allclose(np.asarray(out_bf16[:, :dim], dtype=np.float32),
                               np.asarray(ref_big), rtol=0, atol=1e-2)
    np.testing.assert_allclose(np.asarray(out_bf16[:, dim:], dtype=np.float32),
                               1.0, rtol=0, atol=0)

    # 5) Tiny-N fallback (plain jnp; documents the Pallas crossover point).
    out_tiny = jax.block_until_ready(time_encode(t, w))  # 32 rows < min_pallas_n
    np.testing.assert_allclose(np.asarray(out_tiny), np.asarray(ref),
                               rtol=1e-5, atol=1e-5)

    print("KERNEL_OK")
</pallas_src>

<mosaic_0001>
module attributes {stable_mosaic.version = 11 : i64} {
  func.func @time_encode_kernel(%arg0: i32, %arg1: memref<32x1xf32, #tpu.memory_space<vmem>>, %arg2: memref<1x100xf32, #tpu.memory_space<vmem>>, %arg3: memref<32x100xf32, #tpu.memory_space<vmem>>) attributes {dimension_semantics = [#tpu.dimension_semantics<parallel>], iteration_bounds = array<i64: 1>, scalar_prefetch = 0 : i64, scratch_operands = 0 : i64, tpu.core_type = #tpu.core_type<tc>, window_params = [{transform_indices = @transform_0, window_bounds = array<i64: 32, 1>}, {pipeline_mode = #tpu.pipeline_mode<synchronous>, transform_indices = @transform_1, window_bounds = array<i64: 1, 100>}, {transform_indices = @transform_2, window_bounds = array<i64: 32, 100>}]} {
    %c0 = arith.constant 0 : index
    %c0_0 = arith.constant 0 : index
    %0 = vector.load %arg1[%c0, %c0_0] : memref<32x1xf32, #tpu.memory_space<vmem>>, vector<32x1xf32>
    %c0_1 = arith.constant 0 : index
    %c0_2 = arith.constant 0 : index
    %1 = vector.load %arg2[%c0_1, %c0_2] : memref<1x100xf32, #tpu.memory_space<vmem>>, vector<1x100xf32>
    %2 = vector.broadcast %0 : vector<32x1xf32> to vector<32x100xf32>
    %3 = vector.broadcast %1 : vector<1x100xf32> to vector<32x100xf32>
    %4 = arith.mulf %2, %3 : vector<32x100xf32>
    %5 = math.cos %4 : vector<32x100xf32>
    %c0_3 = arith.constant 0 : index
    %c0_4 = arith.constant 0 : index
    %6 = vector.load %arg3[%c0_3, %c0_4] : memref<32x100xf32, #tpu.memory_space<vmem>>, vector<32x100xf32>
    tpu.vector_store %arg3[%c0_3, %c0_4], %5 {strides = array<i32>} : memref<32x100xf32, #tpu.memory_space<vmem>>, vector<32x100xf32>,
    return
  }
  func.func @transform_0(%arg0: i32) -> (i32, i32) {
    %c0_i32 = arith.constant 0 : i32
    %c0_i32_0 = arith.constant 0 : i32
    return %arg0, %c0_i32 : i32, i32
  }
  func.func @transform_1(%arg0: i32) -> (i32, i32) {
    %c0_i32 = arith.constant 0 : i32
    %c0_i32_0 = arith.constant 0 : i32
    %c0_i32_1 = arith.constant 0 : i32
    return %c0_i32, %c0_i32_0 : i32, i32
  }
  func.func @transform_2(%arg0: i32) -> (i32, i32) {
    %c0_i32 = arith.constant 0 : i32
    %c0_i32_0 = arith.constant 0 : i32
    return %arg0, %c0_i32 : i32, i32
  }
}

</mosaic_0001>

<bundles_post_ra>
// kernel: tpu_custom_call.1
= control target key start
LH: loop header
LB: loop body
LE: loop exit
PB: predicated region body
PF: predicated region fallthrough
CT: control target
= control target key end

     0   :  { %v734_v2 = vmov 0   ;;  %s1217_s0 = inlined_call_operand.vmem [shape: f32[32,1], index: 0, kind: input, shape index: {}]   ;;  %s1218_s1 = inlined_call_operand.vmem [shape: f32[1,100], index: 1, kind: input, shape index: {}]   ;;  %s1219_s2 = inlined_call_operand.hbm [shape: f32[32,100], index: 2, kind: output, shape index: {}]  }
   0x1   :  { %v14_v0 = vld [vmem:[%s1217_s0 + $0x10] sm:$0xff]  ;;  %v12_v1 = vld [vmem:[%s1217_s0] sm:$0xff]  ;;  %706 = vset.pattern.permute.xlu1 %v734_v2  ;;  %705 = vset.pattern.permute.xlu0 %v734_v2 }
   0x2   :  { %29 = vperm.xlu1 %706, %v14_v0   ;;  %19 = vperm.xlu0 %705, %v12_v1  }
   0x3   :  { %7 = vsyncpa [#allocation3], 0  ;;  %v15_v3 = vld [vmem:[%s1217_s0 + $0x18] sm:$0xff]  ;;  %v13_v4 = vld [vmem:[%s1217_s0 + $0x8] sm:$0xff]  ;;  %v735_v36 = vmov 683565275  }
   0x4   :  { %v776_v5 = vld [vmem:[%s1218_s1] ss:$0 sm:$0xff]  ;;  %v736_v38 = vmov 2475754826   ;;  %v737_v42 = vmov 2131351028  }
   0x5   :  { %v738_v45 = vmov 2102212464   ;;  %v739_v48 = vmov 920167782   ;;  %v740_v51 = vmov 1326507024  }
   0x6   :  { %s741_s0 = smov [#allocation2]   ;;  %s671_s21 = sshll.u32 %s1219_s2, 4  ;;  %s672_s21 = int_to_ptr.hbm [resolvable:$true] %s671_s21 }
   0x7   :  { %s669_s1 = sshll.u32 %s741_s0, 4  ;;  %s742_s22 = smov 128   ;;  %s670_s1 = int_to_ptr.vmem [resolvable:$true] %s669_s1 }
   0x8   :  { %s743_s23 = smov 8  }
   0xa   :  { %34 = vperm.xlu1 %706, %v15_v3   ;;  %24 = vperm.xlu0 %705, %v13_v4  }
  0x74   :  { %v30_v6 = vpop.permute.xlu1 %29  ;;  %v20_v7 = vpop.permute.xlu0 %19 }
  0x75   :  { %v779_v8 = vmul.f32 %v776_v5, %v30_v6  ;;  %v782_v9 = vmul.f32 %v776_v5, %v20_v7 }
  0x77   :  { %v352_v10 = vand.u32 2147483647, %v779_v8  ;;  %v355_v11 = vand.u32 2139095040, %v779_v8  ;;  %v44_v12 = vand.u32 2147483647, %v782_v9  ;;  %v47_v13 = vand.u32 2139095040, %v782_v9 }
  0x79   :  { %v356_v14 = vshrl.u32 %v355_v11, 23  ;;  %v359_v15 = vand.u32 8388607, %v352_v10  ;;  %v48_v16 = vshrl.u32 %v47_v13, 23  ;;  %v51_v17 = vand.u32 8388607, %v44_v12 }
  0x7b   :  { %v689_v18 = vadd.s32 4294967169, %v356_v14  ;;  %v360_v19 = vor.u32 8388608, %v359_v15  ;;  %v683_v20 = vadd.s32 4294967169, %v48_v16  ;;  %v52_v21 = vor.u32 8388608, %v51_v17 }
  0x7c   :  { %v35_v25 = vpop.permute.xlu1 %34 }
  0x7d   :  { %v362_v22 = vadd.s32 1, %v689_v18  ;;  %v54_v23 = vadd.s32 1, %v683_v20  ;;  %v792_v24 = vshll.u32 %v360_v19, 8  ;;  %v794_v27 = vshll.u32 %v52_v21, 8 }
  0x7e   :  { %v797_v30 = vmul.f32 %v776_v5, %v35_v25 }
  0x7f   :  { %vm363_vm0 = vcmp.gt.s32.totalorder %v362_v22, 0  ;;  %vm55_vm1 = vcmp.gt.s32.totalorder %v54_v23, 0  ;;  %v800_v32 = vand.u32 65535, %v792_v24  ;;  %v803_v33 = vshrl.u32 %v792_v24, 16 }
  0x80   :  { %v364_v26 = vsel %vm363_vm0, %v362_v22, 0  ;;  %v56_v29 = vsel %vm55_vm1, %v54_v23, 0  ;;  %v812_v40 = vand.u32 65535, %v794_v27 }
  0x81   :  { %v366_v28 = vand.u32 31, %v364_v26  ;;  %v805_v34 = vand.u32 31, %v56_v29  ;;  %v807_v35 = vshrl.u32 %v364_v26, 5  ;;  %v854_v21 = vshrl.u32 %v56_v29, 5 }
  0x83   :  { %v367_v31 = vsub.s32 32, %v366_v28  ;;  %v369_v37 = vshll.u32 %v735_v36, %v366_v28  ;;  %v372_v39 = vshll.u32 %v736_v38, %v366_v28  ;;  %v375_v44 = vshll.u32 %v737_v42, %v366_v28 }
  0x84   :  { %v378_v47 = vshll.u32 %v738_v45, %v366_v28  ;;  %v381_v50 = vshll.u32 %v739_v48, %v366_v28  ;;  %v823_v56 = vsub.s32 32, %v805_v34  ;;  %vm384_vm2 = vcmp.lt.s32.totalorder %v807_v35, 1 }
  0x85   :  { %v370_v41 = vshrl.u32 %v736_v38, %v367_v31  ;;  %v373_v43 = vshrl.u32 %v737_v42, %v367_v31  ;;  %v376_v46 = vshrl.u32 %v738_v45, %v367_v31  ;;  %v379_v49 = vshrl.u32 %v739_v48, %v367_v31 }
  0x86   :  { %v382_v52 = vshrl.u32 %v740_v51, %v367_v31  ;;  %vm385_vm3 = vcmp.lt.s32.totalorder %v807_v35, 2  ;;  %v368_v59 = vshrl.u32 %v735_v36, %v367_v31  ;;  %vm387_vm4 = vcmp.lt.s32.totalorder %v807_v35, 4 }
  0x87   :  { %v371_v53 = vor.u32 %v370_v41, %v369_v37  ;;  %v374_v54 = vor.u32 %v373_v43, %v372_v39  ;;  %v377_v55 = vor.u32 %v376_v46, %v375_v44  ;;  %v380_v57 = vor.u32 %v379_v49, %v378_v47 }
  0x88   :  { %v383_v58 = vor.u32 %v382_v52, %v381_v50  ;;  %vm386_vm5 = vcmp.lt.s32.totalorder %v807_v35, 3  ;;  %v61_v0 = vshll.u32 %v735_v36, %v805_v34  ;;  %v62_v6 = vshrl.u32 %v736_v38, %v823_v56 }
  0x89   :  { %v392_v60 = vsel %vm384_vm2, %v371_v53, %v374_v54  ;;  %v396_v61 = vsel %vm384_vm2, %v374_v54, %v377_v55  ;;  %v393_v62 = vsel %vm387_vm4, %v380_v57, 920167782  ;;  %v389_v1 = vsel %vm387_vm4, %v377_v55, 2102212464 }
  0x8a   :  { %v397_v63 = vsel %vm387_vm4, %v383_v58, 1326507024  ;;  %v394_v3 = vsel %vm386_vm5, %v377_v55, %v393_v62  ;;  %v64_v13 = vshll.u32 %v736_v38, %v805_v34  ;;  %v65_v14 = vshrl.u32 %v737_v42, %v823_v56 }
  0x8b   :  { %v398_v4 = vsel %vm386_vm5, %v380_v57, %v397_v63  ;;  %v395_v7 = vsel %vm385_vm3, %v392_v60, %v394_v3  ;;  %v388_v19 = vsel %vm384_vm2, %v368_v59, %v371_v53  ;;  %v390_v20 = vsel %vm386_vm5, %v374_v54, %v389_v1 }
  0x8c   :  { %v399_v11 = vsel %vm385_vm3, %v396_v61, %v398_v4  ;;  %v425_v17 = vand.u32 65535, %v395_v7  ;;  %v426_v18 = vshrl.u32 %v395_v7, 16  ;;  %v856_v22 = vor.u32 %v62_v6, %v61_v0 }
  0x8d   :  { %v403_v15 = vand.u32 65535, %v399_v11  ;;  %v404_v16 = vshrl.u32 %v399_v11, 16  ;;  %v860_v26 = vor.u32 %v65_v14, %v64_v13  ;;  %v68_v28 = vshrl.u32 %v738_v45, %v823_v56 }
  0x8e   :  { %v428_v37 = vmul.u32 %v426_v18, %v800_v32  ;;  %v429_v39 = vmul.u32 %v425_v17, %v803_v33  ;;  %v67_v29 = vshll.u32 %v737_v42, %v805_v34  ;;  %v427_v44 = vmul.u32 %v425_v17, %v800_v32 }
  0x8f   :  { %v406_v23 = vmul.u32 %v404_v16, %v800_v32  ;;  %v407_v25 = vmul.u32 %v403_v15, %v803_v33  ;;  %v405_v31 = vmul.u32 %v403_v15, %v800_v32  ;;  %v408_v41 = vmul.u32 %v404_v16, %v803_v33 }
  0x90   :  { %v430_v46 = vmul.u32 %v426_v18, %v803_v33  ;;  %v431_v52 = vshll.u32 %v428_v37, 16  ;;  %v433_v54 = vshll.u32 %v429_v39, 16  ;;  %v69_v55 = vor.u32 %v68_v28, %v67_v29 }
  0x91   :  { %v409_v43 = vshll.u32 %v406_v23, 16  ;;  %v410_v47 = vshrl.u32 %v406_v23, 16  ;;  %v411_v49 = vshll.u32 %v407_v25, 16  ;;  %v412_v50 = vshrl.u32 %v407_v25, 16 }
  0x92   :  { %vm435_vm7 = vc.u32 %v427_v44, %v431_v52  ;;  %v437_v58 = vadd.s32 %v431_v52, %v427_v44  ;;  %v71_v59 = vshrl.u32 %v739_v48, %v823_v56  ;;  %v70_v33 = vshll.u32 %v738_v45, %v805_v34 }
  0x93   :  { %vm413_vm6 = vc.u32 %v405_v31, %v409_v43  ;;  %v415_v53 = vadd.s32 %v409_v43, %v405_v31  ;;  %v436_v32 = vsel %vm435_vm7, 1, %v734_v2  ;;  %v73_v63 = vshll.u32 %v739_v48, %v805_v34 }
  0x94   :  { %v414_v57 = vsel %vm413_vm6, 1, %v734_v2  ;;  %v438_v62 = vadd.s32 %v436_v32, %v430_v46  ;;  %vm439_vm9 = vc.u32 %v437_v58, %v433_v54  ;;  %v72_v3 = vor.u32 %v71_v59, %v70_v33 }
  0x95   :  { %v416_v60 = vadd.s32 %v414_v57, %v408_v41  ;;  %vm417_vm8 = vc.u32 %v415_v53, %v411_v49  ;;  %v440_v1 = vsel %vm439_vm9, 1, %v734_v2  ;;  %v74_v4 = vshrl.u32 %v740_v51, %v823_v56 }
  0x96   :  { %v418_v61 = vsel %vm417_vm8, 1, %v734_v2  ;;  %v432_v6 = vshrl.u32 %v428_v37, 16  ;;  %v434_v7 = vshrl.u32 %v429_v39, 16  ;;  %v884_v11 = vadd.s32 %v437_v58, %v433_v54 }
  0x97   :  { %v420_v0 = vadd.s32 %v418_v61, %v416_v60  ;;  %v442_v13 = vadd.s32 %v440_v1, %v438_v62  ;;  %v75_v15 = vor.u32 %v74_v4, %v73_v63  ;;  %vm76_vm10 = vcmp.lt.s32.totalorder %v854_v21, 1 }
  0x98   :  { %vm79_vm11 = vcmp.lt.s32.totalorder %v854_v21, 4  ;;  %vm78_vm12 = vcmp.lt.s32.totalorder %v854_v21, 3  ;;  %v84_v34 = vsel %vm76_vm10, %v856_v22, %v860_v26  ;;  %vm77_vm13 = vcmp.lt.s32.totalorder %v854_v21, 2 }
  0x99   :  { %v421_v14 = vadd.s32 %v420_v0, %v410_v47  ;;  %v443_v16 = vadd.s32 %v442_v13, %v432_v6  ;;  %v85_v17 = vsel %vm79_vm11, %v72_v3, 920167782  ;;  %v88_v25 = vsel %vm76_vm10, %v860_v26, %v69_v55 }
  0x9a   :  { %v86_v23 = vsel %vm78_vm12, %v69_v55, %v85_v17  ;;  %v391_v28 = vsel %vm385_vm3, %v388_v19, %v390_v20  ;;  %v89_v39 = vsel %vm79_vm11, %v75_v15, 1326507024  ;;  %v94_v41 = vshrl.u32 %v794_v27, 16 }
  0x9b   :  { %v895_v18 = vadd.s32 %v421_v14, %v412_v50  ;;  %v444_v31 = vadd.s32 %v443_v16, %v434_v7  ;;  %v87_v37 = vsel %vm77_vm13, %v84_v34, %v86_v23  ;;  %v90_v29 = vsel %vm78_vm12, %v72_v3, %v89_v39 }
  0x9c   :  { %v117_v43 = vand.u32 65535, %v87_v37  ;;  %v91_v35 = vsel %vm77_vm13, %v88_v25, %v90_v29  ;;  %v118_v19 = vshrl.u32 %v87_v37, 16  ;;  %v509_v20 = vand.u32 2139095040, %v797_v30 }
  0x9d   :  { %vm447_vm14 = vc.u32 %v895_v18, %v884_v11  ;;  %v448_v44 = vadd.s32 1, %v444_v31  ;;  %v445_v46 = vmul.u32 %v792_v24, %v391_v28  ;;  %v95_v47 = vand.u32 65535, %v91_v35 }
  0x9e   :  { %v96_v49 = vshrl.u32 %v91_v35, 16  ;;  %v60_v52 = vshrl.u32 %v735_v36, %v823_v56  ;;  %v120_v53 = vmul.u32 %v118_v19, %v812_v40  ;;  %v121_v54 = vmul.u32 %v117_v43, %v94_v41 }
  0x9f   :  { %v449_v50 = vsel %vm447_vm14, %v448_v44, %v444_v31  ;;  %v81_v58 = vsel %vm79_vm11, %v69_v55, 2102212464  ;;  %v99_v60 = vmul.u32 %v95_v47, %v94_v41  ;;  %v119_v32 = vmul.u32 %v117_v43, %v812_v40 }
  0xa0   :  { %v450_v57 = vadd.s32 %v449_v50, %v445_v46  ;;  %v98_v59 = vmul.u32 %v96_v49, %v812_v40  ;;  %v122_v33 = vmul.u32 %v118_v19, %v94_v41  ;;  %v123_v24 = vshll.u32 %v120_v53, 16 }
  0xa1   :  { %v510_v61 = vshrl.u32 %v509_v20, 23  ;;  %v97_v63 = vmul.u32 %v95_v47, %v812_v40  ;;  %v100_v0 = vmul.u32 %v96_v49, %v94_v41  ;;  %v103_v1 = vshll.u32 %v99_v60, 16 }
  0xa2   :  { %v451_v62 = vadd.s32 536870912, %v450_v57  ;;  %v101_v56 = vshll.u32 %v98_v59, 16  ;;  %v125_v3 = vshll.u32 %v121_v54, 16  ;;  %vm127_vm15 = vc.u32 %v119_v32, %v123_v24 }
  0xa3   :  { %v129_v4 = vadd.s32 %v123_v24, %v119_v32  ;;  %v128_v7 = vsel %vm127_vm15, 1, %v734_v2  ;;  %v506_v15 = vand.u32 2147483647, %v797_v30  ;;  %v80_v40 = vsel %vm76_vm10, %v60_v52, %v856_v22 }
  0xa4   :  { %v452_v6 = vshrl.u32 %v451_v62, 30  ;;  %vm105_vm0 = vc.u32 %v97_v63, %v101_v56  ;;  %v107_v55 = vadd.s32 %v101_v56, %v97_v63  ;;  %v130_v14 = vadd.s32 %v128_v7, %v122_v33 }
  0xa5   :  { %v106_v13 = vsel %vm105_vm0, 1, %v734_v2  ;;  %vm131_vm1 = vc.u32 %v129_v4, %v125_v3  ;;  %v82_v17 = vsel %vm78_vm12, %v860_v26, %v81_v58  ;;  %v692_v28 = vadd.s32 4294967169, %v510_v61 }
  0xa6   :  { %v453_v16 = vshll.u32 %v452_v6, 30  ;;  %v108_v34 = vadd.s32 %v106_v13, %v100_v0  ;;  %vm109_vm2 = vc.u32 %v107_v55, %v103_v1  ;;  %v132_v25 = vsel %vm131_vm1, 1, %v734_v2 }
  0xa7   :  { %v110_v23 = vsel %vm109_vm2, 1, %v734_v2  ;;  %v102_v37 = vshrl.u32 %v98_v59, 16  ;;  %v134_v29 = vadd.s32 %v132_v25, %v130_v14  ;;  %v124_v41 = vshrl.u32 %v120_v53, 16 }
  0xa8   :  { %v454_v31 = vsub.s32 %v450_v57, %v453_v16  ;;  %v112_v39 = vadd.s32 %v110_v23, %v108_v34  ;;  %v516_v43 = vadd.s32 1, %v692_v28  ;;  %v83_v22 = vsel %vm77_vm13, %v80_v40, %v82_v17 }
  0xa9   :  { %v104_v19 = vshrl.u32 %v99_v60, 16  ;;  %v126_v20 = vshrl.u32 %v121_v54, 16  ;;  %v135_v26 = vadd.s32 %v134_v29, %v124_v41  ;;  %v476_v47 = vsub.s32 4, %v452_v6 }
  0xaa   :  { %vm455_vm3 = vcmp.lt.s32.totalorder %v454_v31, 0  ;;  %v456_v44 = vsub.s32 0, %v454_v31  ;;  %v113_v35 = vadd.s32 %v112_v39, %v102_v37  ;;  %vm517_vm4 = vcmp.gt.s32.totalorder %v516_v43, 0 }
  0xab   :  { %v939_v49 = vadd.s32 %v129_v4, %v125_v3  ;;  %v513_v50 = vand.u32 8388607, %v506_v15  ;;  %v136_v57 = vadd.s32 %v135_v26, %v126_v20  ;;  %v518_v58 = vsel %vm517_vm4, %v516_v43, 0 }
  0xac   :  { %v457_v46 = vsel %vm455_vm3, %v456_v44, %v454_v31  ;;  %v943_v53 = vadd.s32 %v113_v35, %v104_v19  ;;  %v520_v59 = vand.u32 31, %v518_v58  ;;  %vm354_vm5 = vcmp.lt.s32.totalorder %v779_v8, 0 }
  0xad   :  { %v458_v52 = vclz %v457_v46  ;;  %v140_v54 = vadd.s32 1, %v136_v57  ;;  %v446_v60 = vadd.s32 %v884_v11, %v895_v18  ;;  %v477_v32 = vsel %vm354_vm5, %v476_v47, %v452_v6 }
  0xae   :  { %vm139_vm6 = vc.u32 %v943_v53, %v939_v49  ;;  %v137_v33 = vmul.u32 %v794_v27, %v83_v22  ;;  %v521_v24 = vsub.s32 32, %v520_v59  ;;  %v514_v62 = vor.u32 8388608, %v513_v50 }
  0xaf   :  { %v690_v21 = vadd.s32 4294967294, %v458_v52  ;;  %v141_v61 = vsel %vm139_vm6, %v140_v54, %v136_v57  ;;  %v953_v63 = vshrl.u32 %v518_v58, 5  ;;  %v523_v1 = vshll.u32 %v735_v36, %v520_v59  ;;  %v25_v52 = vpop.permute.xlu0 %24 }
  0xb0   :  { %v142_v56 = vadd.s32 %v141_v61, %v137_v33  ;;  %v524_v3 = vshrl.u32 %v736_v38, %v521_v24  ;;  %v526_v11 = vshll.u32 %v736_v38, %v520_v59  ;;  %v527_v18 = vshrl.u32 %v737_v42, %v521_v24 }
  0xb1   :  { %vm691_vm7 = vcmp.lt.s32.totalorder %v690_v21, 0  ;;  %v530_v27 = vshrl.u32 %v738_v45, %v521_v24  ;;  %v532_v7 = vshll.u32 %v738_v45, %v520_v59  ;;  %v533_v13 = vshrl.u32 %v739_v48, %v521_v24 }
  0xb2   :  { %v461_v0 = vsel %vm691_vm7, 0, %v690_v21  ;;  %v143_v6 = vadd.s32 536870912, %v142_v56  ;;  %v536_v34 = vshrl.u32 %v740_v51, %v521_v24  ;;  %v525_v23 = vor.u32 %v524_v3, %v523_v1 }
  0xb3   :  { %v462_v4 = vsub.s32 32, %v461_v0  ;;  %v466_v55 = vsub.s32 4294967266, %v461_v0  ;;  %v463_v14 = vshll.u32 %v454_v31, %v461_v0  ;;  %v965_v25 = vor.u32 %v527_v18, %v526_v11 }
  0xb4   :  { %v963_v17 = vshrl.u32 %v143_v6, 30  ;;  %v529_v28 = vshll.u32 %v737_v42, %v520_v59  ;;  %v534_v29 = vor.u32 %v533_v13, %v532_v7  ;;  %v535_v41 = vshll.u32 %v739_v48, %v520_v59 }
  0xb5   :  { %v464_v16 = vshrl.u32 %v446_v60, %v462_v4  ;;  %v467_v40 = vadd.s32 127, %v466_v55  ;;  %vm971_vm8 = vcmp.le.f32.partialorder %v352_v10, 0.7853982  ;;  %vm538_vm9 = vcmp.lt.s32.totalorder %v953_v63, 1 }
  0xb6   :  { %v145_v43 = vshll.u32 %v963_v17, 30  ;;  %v531_v44 = vor.u32 %v530_v27, %v529_v28  ;;  %v479_v35 = vsel %vm971_vm8, 0, %v477_v32  ;;  %v537_v19 = vor.u32 %v536_v34, %v535_v41 }
  0xb7   :  { %v465_v37 = vor.u32 %v464_v16, %v463_v14  ;;  %v468_v39 = vshll.u32 %v467_v40, 23  ;;  %vm541_vm10 = vcmp.lt.s32.totalorder %v953_v63, 4  ;;  %v546_v10 = vsel %vm538_vm9, %v525_v23, %v965_v25 }
  0xb8   :  { %v979_v20 = vsub.s32 %v142_v56, %v145_v43  ;;  %v985_v26 = vshll.u32 %v514_v62, 8  ;;  %vm540_vm11 = vcmp.lt.s32.totalorder %v953_v63, 3  ;;  %v547_v50 = vsel %vm541_vm10, %v534_v29, 920167782 }
  0xb9   :  { %v469_v22 = vor.u32 4788187, %v468_v39  ;;  %v472_v47 = vcvt.s32.f32 %v465_v37  ;;  %vm539_vm13 = vcmp.lt.s32.totalorder %v953_v63, 2  ;;  %v548_v58 = vsel %vm540_vm11, %v531_v44, %v547_v50 }
  0xba   :  { %vm147_vm12 = vcmp.lt.s32.totalorder %v979_v20, 0  ;;  %v148_v57 = vsub.s32 0, %v979_v20  ;;  %v549_v21 = vsel %vm539_vm13, %v546_v10, %v548_v58  ;;  %v550_v54 = vsel %vm538_vm9, %v965_v25, %v531_v44 }
  0xbb   :  { %v470_v46 = vand.u32 2147483647, %v469_v22  ;;  %v551_v60 = vsel %vm541_vm10, %v537_v19, 1326507024  ;;  %v1002_v32 = vand.u32 3, %v479_v35  ;;  %v555_v61 = vand.u32 65535, %v985_v26 }
  0xbc   :  { %v149_v33 = vsel %vm147_vm12, %v148_v57, %v979_v20  ;;  %v1007_v62 = vmul.f32 %v776_v5, %v25_v52  ;;  %v552_v1 = vsel %vm540_vm11, %v534_v29, %v551_v60  ;;  %v556_v3 = vshrl.u32 %v985_v26, 16 }
  0xbd   :  { %v473_v59 = vmul.f32 %v472_v47, %v470_v46  ;;  %v150_v56 = vclz %v149_v33  ;;  %v522_v4 = vshrl.u32 %v735_v36, %v521_v24  ;;  %v553_v55 = vsel %vm539_vm13, %v550_v54, %v552_v1 }
  0xbe   :  { %v579_v11 = vand.u32 65535, %v549_v21  ;;  %v580_v18 = vshrl.u32 %v549_v21, 16  ;;  %v557_v5 = vand.u32 65535, %v553_v55  ;;  %v558_v7 = vshrl.u32 %v553_v55, 16 }
  0xbf   :  { %v474_v0 = vxor.u32 2147483648, %v473_v59  ;;  %v684_v27 = vadd.s32 4294967294, %v150_v56  ;;  %v138_v14 = vadd.s32 %v939_v49, %v943_v53  ;;  %v168_v24 = vsub.s32 4, %v963_v17 }
  0xc0   :  { %v1027_v16 = vsel %vm538_vm9, %v522_v4, %v525_v23  ;;  %v543_v34 = vsel %vm541_vm10, %v531_v44, 2102212464  ;;  %v560_v28 = vmul.u32 %v558_v7, %v555_v61  ;;  %v1033_v39 = vmul.u32 %v557_v5, %v556_v3 }
  0xc1   :  { %v475_v6 = vsel %vm354_vm5, %v474_v0, %v473_v59  ;;  %vm685_vm14 = vcmp.lt.s32.totalorder %v684_v27, 0  ;;  %v581_v29 = vmul.u32 %v579_v11, %v555_v61  ;;  %v1035_v41 = vmul.u32 %v580_v18, %v555_v61 }
  0xc2   :  { %v1020_v13 = vsel %vm971_vm8, %v779_v8, %v475_v6  ;;  %v153_v37 = vsel %vm685_vm14, 0, %v684_v27  ;;  %v1037_v43 = vmul.u32 %v579_v11, %v556_v3  ;;  %v559_v22 = vmul.u32 %v557_v5, %v555_v61 }
  0xc3   :  { %v480_v40 = vmul.f32 %v1020_v13, %v1020_v13  ;;  %v154_v31 = vsub.s32 32, %v153_v37  ;;  %v158_v23 = vsub.s32 4294967266, %v153_v37  ;;  %v562_v35 = vmul.u32 %v558_v7, %v556_v3 }
  0xc4   :  { %v563_v19 = vshll.u32 %v560_v28, 16  ;;  %v155_v44 = vshll.u32 %v979_v20, %v153_v37  ;;  %v565_v52 = vshll.u32 %v1033_v39, 16  ;;  %v585_v54 = vshll.u32 %v1035_v41, 16 }
  0xc5   :  { %v481_v49 = vmul.f32 -0.001358992, %v480_v40  ;;  %v488_v53 = vmul.f32 -0.00019511016, %v480_v40  ;;  %v156_v47 = vshrl.u32 %v138_v14, %v154_v31  ;;  %v159_v50 = vadd.s32 127, %v158_v23 }
  0xc6   :  { %vm567_vm15 = vc.u32 %v559_v22, %v563_v19  ;;  %v569_v57 = vadd.s32 %v563_v19, %v559_v22  ;;  %vm46_vm0 = vcmp.lt.s32.totalorder %v782_v9, 0  ;;  %v584_v1 = vmul.u32 %v580_v18, %v556_v3 }
  0xc7   :  { %v482_v10 = vadd.f32 0.041655596, %v481_v49  ;;  %v489_v46 = vadd.f32 0.008332121, %v488_v53  ;;  %v568_v21 = vsel %vm567_vm15, 1, %v734_v2  ;;  %v157_v60 = vor.u32 %v156_v47, %v155_v44 }
  0xc8   :  { %v160_v33 = vshll.u32 %v159_v50, 23  ;;  %v570_v61 = vadd.s32 %v568_v21, %v562_v35  ;;  %vm571_vm1 = vc.u32 %v569_v57, %v565_v52  ;;  %vm498_vm2 = vcmp.eq.s32.totalorder %v1002_v32, 0 }
  0xc9   :  { %v483_v58 = vmul.f32 %v482_v10, %v480_v40  ;;  %v490_v59 = vmul.f32 %v489_v46, %v480_v40  ;;  %v572_v56 = vsel %vm571_vm1, 1, %v734_v2  ;;  %vm1048_vm3 = vcmp.le.f32.partialorder %v44_v12, 0.7853982 }
  0xca   :  { %v161_v55 = vor.u32 4788187, %v160_v33  ;;  %v564_v11 = vshrl.u32 %v560_v28, 16  ;;  %v574_v6 = vadd.s32 %v572_v56, %v570_v61  ;;  %v587_v27 = vshll.u32 %v1037_v43, 16 }
  0xcb   :  { %v484_v0 = vadd.f32 -0.4999988, %v483_v58  ;;  %v491_v20 = vadd.f32 -0.16666654, %v490_v59  ;;  %vm660_vm4 = vcmask 818176   ;;  %vm497_vm5 = vcmp.lt.s32.totalorder %v1002_v32, 2 }
  0xcc   :  { %vm589_vm6 = vc.u32 %v581_v29, %v585_v54  ;;  %v591_v3 = vadd.s32 %v585_v54, %v581_v29  ;;  %vm495_vm7 = vweird.f32 %v779_v8  ;;  %v162_v18 = vand.u32 2147483647, %v161_v55 }
  0xcd   :  { %v485_v5 = vmul.f32 %v484_v0, %v480_v40  ;;  %v492_v7 = vmul.f32 %v491_v20, %v480_v40  ;;  %v164_v14 = vcvt.s32.f32 %v157_v60  ;;  %v575_v12 = vadd.s32 %v574_v6, %v564_v11 }
  0xce   :  { %v590_v37 = vsel %vm589_vm6, 1, %v734_v2  ;;  %vm593_vm8 = vc.u32 %v591_v3, %v587_v27  ;;  %v544_v40 = vsel %vm540_vm11, %v965_v25, %v543_v34  ;;  %v566_v23 = vshrl.u32 %v1033_v39, 16 }
  0xcf   :  { %v486_v49 = vadd.f32 1.0, %v485_v5  ;;  %v493_v53 = vadd.f32 1.0, %v492_v7  ;;  %v592_v28 = vadd.s32 %v590_v37, %v584_v1  ;;  %v165_v31 = vmul.f32 %v164_v14, %v162_v18 }
  0xd0   :  { %v594_v29 = vsel %vm593_vm8, 1, %v734_v2  ;;  %v586_v19 = vshrl.u32 %v1035_v41, 16  ;;  %vm501_vm9 = vcmp.eq.s32.totalorder %v1002_v32, 2  ;;  %v1064_v44 = vadd.s32 %v575_v12, %v566_v23 }
  0xd1   :  { %v494_v22 = vmul.f32 %v493_v53, %v1020_v13  ;;  %v502_v35 = vxor.u32 2147483648, %v486_v49  ;;  %v596_v10 = vadd.s32 %v594_v29, %v592_v28  ;;  %v166_v46 = vxor.u32 2147483648, %v165_v31 }
  0xd2   :  { %v201_v47 = vand.u32 2139095040, %v1007_v62  ;;  %v169_v25 = vsel %vm46_vm0, %v168_v24, %v963_v17  ;;  %v588_v13 = vshrl.u32 %v1037_v43, 16  ;;  %v545_v41 = vsel %vm539_vm13, %v1027_v16, %v544_v40 }
  0xd3   :  { %v499_v50 = vxor.u32 2147483648, %v494_v22  ;;  %v597_v34 = vadd.s32 %v596_v10, %v586_v19  ;;  %v167_v39 = vsel %vm46_vm0, %v166_v46, %v165_v31  ;;  %v1078_v52 = vadd.s32 %v591_v3, %v587_v27 }
  0xd4   :  { %v202_v57 = vshrl.u32 %v201_v47, 23  ;;  %v503_v59 = vsel %vm501_vm9, %v502_v35, %v494_v22  ;;  %v170_v17 = vsel %vm1048_vm3, %v782_v9, %v167_v39  ;;  %v599_v61 = vmul.u32 %v985_v26, %v545_v41 }
  0xd5   :  { %v500_v58 = vsel %vm498_vm2, %v486_v49, %v499_v50  ;;  %v598_v24 = vadd.s32 %v597_v34, %v588_v13  ;;  %v172_v21 = vmul.f32 %v170_v17, %v170_v17  ;;  %vm601_vm10 = vc.u32 %v1064_v44, %v1078_v52 }
  0xd6   :  { %v504_v43 = vsel %vm497_vm5, %v500_v58, %v503_v59  ;;  %v686_v63 = vadd.s32 4294967169, %v202_v57  ;;  %v171_v32 = vsel %vm1048_vm3, 0, %v169_v25  ;;  %v198_v56 = vand.u32 2147483647, %v1007_v62 }
  0xd7   :  { %v505_v16 = vsel %vm495_vm7, nan, %v504_v43  ;;  %v602_v54 = vadd.s32 1, %v598_v24  ;;  %v173_v60 = vmul.f32 -0.001358992, %v172_v21  ;;  %v180_v33 = vmul.f32 -0.00019511016, %v172_v21 }
  0xd8   :  { %663 = vst.msk [vmem:[#allocation2 + $0x10] sm:$0xff] %vm660_vm4, %v505_v16  ;;  %v208_v0 = vadd.s32 1, %v686_v63  ;;  %v188_v7 = vand.u32 3, %v171_v32  ;;  %v205_v3 = vand.u32 8388607, %v198_v56  ;;  %vm187_vm12 = vweird.f32 %v782_v9 }
  0xd9   :  { %v603_v20 = vsel %vm601_vm10, %v602_v54, %v598_v24  ;;  %v174_v1 = vadd.f32 0.041655596, %v173_v60  ;;  %v181_v55 = vadd.f32 0.008332121, %v180_v33  ;;  %vm1164_vm7 = vcmp.le.f32.partialorder %v506_v15, 0.7853982 }
  0xda   :  { %v604_v11 = vadd.s32 %v603_v20, %v599_v61  ;;  %vm209_vm11 = vcmp.gt.s32.totalorder %v208_v0, 0  ;;  %vm189_vm13 = vcmp.lt.s32.totalorder %v188_v7, 2  ;;  %v206_v28 = vor.u32 8388608, %v205_v3 }
  0xdb   :  { %v210_v8 = vsel %vm209_vm11, %v208_v0, 0  ;;  %v175_v6 = vmul.f32 %v174_v1, %v172_v21  ;;  %v182_v27 = vmul.f32 %v181_v55, %v172_v21  ;;  %vm190_vm15 = vcmp.eq.s32.totalorder %v188_v7, 0 }
  0xdc   :  { %v605_v5 = vadd.s32 536870912, %v604_v11  ;;  %v212_v26 = vand.u32 31, %v210_v8  ;;  %v1108_v35 = vshrl.u32 %v210_v8, 5  ;;  %vm193_vm0 = vcmp.eq.s32.totalorder %v188_v7, 2 }
  0xdd   :  { %v176_v18 = vadd.f32 -0.4999988, %v175_v6  ;;  %v183_v14 = vadd.f32 -0.16666654, %v182_v27  ;;  %v1129_v60 = vshll.u32 %v206_v28, 8  ;;  %vm508_vm10 = vcmp.lt.s32.totalorder %v797_v30, 0 }
  0xde   :  { %v1098_v4 = vshrl.u32 %v605_v5, 30  ;;  %v1100_v12 = vsub.s32 32, %v212_v26  ;;  %v215_v19 = vshll.u32 %v735_v36, %v212_v26  ;;  %v218_v10 = vshll.u32 %v736_v38, %v212_v26 }
  0xdf   :  { %v177_v37 = vmul.f32 %v176_v18, %v172_v21  ;;  %v184_v49 = vmul.f32 %v183_v14, %v172_v21  ;;  %v221_v46 = vshll.u32 %v737_v42, %v212_v26  ;;  %v224_v41 = vshll.u32 %v738_v45, %v212_v26 }
  0xe0   :  { %v607_v53 = vshll.u32 %v1098_v4, 30  ;;  %v216_v31 = vshrl.u32 %v736_v38, %v1100_v12  ;;  %v219_v40 = vshrl.u32 %v737_v42, %v1100_v12  ;;  %v222_v47 = vshrl.u32 %v738_v45, %v1100_v12 }
  0xe1   :  { %v178_v23 = vadd.f32 1.0, %v177_v37  ;;  %v185_v29 = vadd.f32 1.0, %v184_v49  ;;  %v225_v57 = vshrl.u32 %v739_v48, %v1100_v12  ;;  %v227_v42 = vshll.u32 %v739_v48, %v212_v26 }
  0xe2   :  { %v608_v22 = vsub.s32 %v604_v11, %v607_v53  ;;  %v1115_v34 = vor.u32 %v216_v31, %v215_v19  ;;  %v1117_v39 = vor.u32 %v219_v40, %v218_v10  ;;  %v228_v59 = vshrl.u32 %v740_v51, %v1100_v12 }
  0xe3   :  { %v186_v50 = vmul.f32 %v185_v29, %v170_v17  ;;  %v194_v25 = vxor.u32 2147483648, %v178_v23  ;;  %v1125_v24 = vor.u32 %v222_v47, %v221_v46  ;;  %v226_v63 = vor.u32 %v225_v57, %v224_v41 }
  0xe4   :  { %vm609_vm14 = vcmp.lt.s32.totalorder %v608_v22, 0  ;;  %v610_v13 = vsub.s32 0, %v608_v22  ;;  %v229_v16 = vor.u32 %v228_v59, %v227_v42  ;;  %vm230_vm1 = vcmp.lt.s32.totalorder %v1108_v35, 1 }
  0xe5   :  { %v191_v58 = vxor.u32 2147483648, %v186_v50  ;;  %v195_v21 = vsel %vm193_vm0, %v194_v25, %v186_v50  ;;  %v600_v51 = vadd.s32 %v1078_v52, %v1064_v44  ;;  %vm233_vm2 = vcmp.lt.s32.totalorder %v1108_v35, 4 }
  0xe6   :  { %v611_v38 = vsel %vm609_vm14, %v610_v13, %v608_v22  ;;  %v238_v33 = vsel %vm230_vm1, %v1115_v34, %v1117_v39  ;;  %vm231_vm5 = vcmp.lt.s32.totalorder %v1108_v35, 2  ;;  %vm232_vm6 = vcmp.lt.s32.totalorder %v1108_v35, 3 }
  0xe7   :  { %v612_v17 = vclz %v611_v38  ;;  %v192_v43 = vsel %vm190_vm15, %v178_v23, %v191_v58  ;;  %v239_v9 = vsel %vm233_vm2, %v226_v63, 920167782  ;;  %v242_v52 = vsel %vm230_vm1, %v1117_v39, %v1125_v24 }
  0xe8   :  { %v196_v45 = vsel %vm189_vm13, %v192_v43, %v195_v21  ;;  %v240_v44 = vsel %vm232_vm6, %v1125_v24, %v239_v9  ;;  %v243_v0 = vsel %vm233_vm2, %v229_v16, 1326507024  ;;  %v247_v55 = vand.u32 65535, %v1129_v60 }
  0xe9   :  { %v693_v54 = vadd.s32 4294967294, %v612_v17  ;;  %v197_v48 = vsel %vm187_vm12, nan, %v196_v45  ;;  %v241_v1 = vsel %vm231_vm5, %v238_v33, %v240_v44  ;;  %v244_v11 = vsel %vm232_vm6, %v226_v63, %v243_v0 }
  0xea   :  { %661 = vst.msk [vmem:[#allocation2] sm:$0xff] %vm660_vm4, %v197_v48  ;;  %v248_v8 = vshrl.u32 %v1129_v60, 16  ;;  %v271_v6 = vand.u32 65535, %v241_v1  ;;  %v272_v27 = vshrl.u32 %v241_v1, 16  ;;  %v245_v26 = vsel %vm231_vm5, %v242_v52, %v244_v11 }
  0xeb   :  { %vm694_vm3 = vcmp.lt.s32.totalorder %v693_v54, 0  ;;  %v249_v18 = vand.u32 65535, %v245_v26  ;;  %v250_v14 = vshrl.u32 %v245_v26, 16  ;;  %v235_v43 = vsel %vm233_vm2, %v1125_v24, 2102212464 }
  0xec   :  { %v615_v61 = vsel %vm694_vm3, 0, %v693_v54  ;;  %v274_v37 = vmul.u32 %v272_v27, %v247_v55  ;;  %v275_v28 = vmul.u32 %v271_v6, %v248_v8  ;;  %v276_v19 = vmul.u32 %v272_v27, %v248_v8 }
  0xed   :  { %v616_v32 = vsub.s32 32, %v615_v61  ;;  %v620_v20 = vsub.s32 4294967266, %v615_v61  ;;  %v617_v5 = vshll.u32 %v608_v22, %v615_v61  ;;  %v252_v31 = vmul.u32 %v250_v14, %v247_v55 }
  0xee   :  { %v253_v40 = vmul.u32 %v249_v18, %v248_v8  ;;  %v273_v22 = vmul.u32 %v271_v6, %v247_v55  ;;  %v277_v10 = vshll.u32 %v274_v37, 16  ;;  %v251_v47 = vmul.u32 %v249_v18, %v247_v55 }
  0xef   :  { %v618_v7 = vshrl.u32 %v600_v51, %v616_v32  ;;  %v621_v3 = vadd.s32 127, %v620_v20  ;;  %v254_v50 = vmul.u32 %v250_v14, %v248_v8  ;;  %v255_v25 = vshll.u32 %v252_v31, 16 }
  0xf0   :  { %v257_v41 = vshll.u32 %v253_v40, 16  ;;  %v279_v57 = vshll.u32 %v275_v28, 16  ;;  %vm281_vm8 = vc.u32 %v273_v22, %v277_v10  ;;  %v283_v15 = vadd.s32 %v277_v10, %v273_v22 }
  0xf1   :  { %v619_v49 = vor.u32 %v618_v7, %v617_v5  ;;  %v622_v53 = vshll.u32 %v621_v3, 23  ;;  %vm259_vm9 = vc.u32 %v251_v47, %v255_v25  ;;  %v261_v58 = vadd.s32 %v255_v25, %v251_v47 }
  0xf2   :  { %v282_v38 = vsel %vm281_vm8, 1, %v734_v2  ;;  %v260_v59 = vsel %vm259_vm9, 1, %v734_v2  ;;  %vm285_vm12 = vc.u32 %v283_v15, %v279_v57  ;;  %v214_v16 = vshrl.u32 %v735_v36, %v1100_v12 }
  0xf3   :  { %v623_v29 = vor.u32 4788187, %v622_v53  ;;  %v626_v46 = vcvt.s32.f32 %v619_v49  ;;  %v284_v17 = vadd.s32 %v282_v38, %v276_v19  ;;  %v262_v21 = vadd.s32 %v260_v59, %v254_v50 }
  0xf4   :  { %vm263_vm11 = vc.u32 %v261_v58, %v257_v41  ;;  %v286_v54 = vsel %vm285_vm12, 1, %v734_v2  ;;  %v256_v48 = vshrl.u32 %v252_v31, 16  ;;  %v278_v33 = vshrl.u32 %v274_v37, 16 }
  0xf5   :  { %v624_v13 = vand.u32 2147483647, %v623_v29  ;;  %v264_v45 = vsel %vm263_vm11, 1, %v734_v2  ;;  %v288_v9 = vadd.s32 %v286_v54, %v284_v17  ;;  %v234_v24 = vsel %vm230_vm1, %v214_v16, %v1115_v34 }
  0xf6   :  { %v266_v51 = vadd.s32 %v264_v45, %v262_v21  ;;  %v236_v44 = vsel %vm232_vm6, %v1117_v39, %v235_v43  ;;  %v258_v36 = vshrl.u32 %v253_v40, 16  ;;  %v280_v52 = vshrl.u32 %v275_v28, 16 }
  0xf7   :  { %v627_v42 = vmul.f32 %v626_v46, %v624_v13  ;;  %v289_v0 = vadd.s32 %v288_v9, %v278_v33  ;;  %v237_v20 = vsel %vm231_vm5, %v234_v24, %v236_v44  ;;  %v287_v55 = vadd.s32 %v283_v15, %v279_v57 }
  0xf8   :  { %v267_v12 = vadd.s32 %v266_v51, %v256_v48  ;;  %v630_v6 = vsub.s32 4, %v1098_v4  ;;  %v291_v7 = vmul.u32 %v1129_v60, %v237_v20  ;;  %vm649_vm2 = vweird.f32 %v797_v30 }
  0xf9   :  { %v628_v63 = vxor.u32 2147483648, %v627_v42  ;;  %v290_v11 = vadd.s32 %v289_v0, %v280_v52  ;;  %vm200_vm5 = vcmp.lt.s32.totalorder %v1007_v62, 0  ;;  %vm1203_vm6 = vcmp.le.f32.partialorder %v198_v56, 0.7853982 }
  0xfa   :  { %v268_v1 = vadd.s32 %v267_v12, %v258_v36  ;;  %v631_v35 = vsel %vm508_vm10, %v630_v6, %v1098_v4 }
  0xfb   :  { %v629_v61 = vsel %vm508_vm10, %v628_v63, %v627_v42  ;;  %v294_v39 = vadd.s32 1, %v290_v11  ;;  %v633_v28 = vsel %vm1164_vm7, 0, %v631_v35  ;;  %vm341_vm10 = vweird.f32 %v1007_v62 }
  0xfc   :  { %v632_v2 = vsel %vm1164_vm7, %v797_v30, %v629_v61  ;;  %vm293_vm13 = vc.u32 %v268_v1, %v287_v55  ;;  %v650_v10 = vand.u32 3, %v633_v28  ;;  %v292_v59 = vadd.s32 %v287_v55, %v268_v1 }
  0xfd   :  { %v634_v32 = vmul.f32 %v632_v2, %v632_v2  ;;  %v295_v3 = vsel %vm293_vm13, %v294_v39, %v290_v11 }
  0xfe   :  { %v296_v14 = vadd.s32 %v295_v3, %v291_v7  ;;  %vm652_vm15 = vcmp.eq.s32.totalorder %v650_v10, 0  ;;  %vm655_vm0 = vcmp.eq.s32.totalorder %v650_v10, 2  ;;  %vm651_vm1 = vcmp.lt.s32.totalorder %v650_v10, 2 }
  0xff   :  { %v635_v34 = vmul.f32 -0.001358992, %v634_v32  ;;  %v642_v8 = vmul.f32 -0.00019511016, %v634_v32 }
 0x100   :  { %v297_v53 = vadd.s32 536870912, %v296_v14 }
 0x101   :  { %v636_v27 = vadd.f32 0.041655596, %v635_v34  ;;  %v643_v5 = vadd.f32 0.008332121, %v642_v8 }
 0x102   :  { %v298_v29 = vshrl.u32 %v297_v53, 30 }
 0x103   :  { %v637_v26 = vmul.f32 %v636_v27, %v634_v32  ;;  %v644_v18 = vmul.f32 %v643_v5, %v634_v32 }
 0x104   :  { %v299_v60 = vshll.u32 %v298_v29, 30  ;;  %v322_v52 = vsub.s32 4, %v298_v29 }
 0x105   :  { %v638_v37 = vadd.f32 -0.4999988, %v637_v26  ;;  %v645_v49 = vadd.f32 -0.16666654, %v644_v18 }
 0x106   :  { %v300_v50 = vsub.s32 %v296_v14, %v299_v60  ;;  %v323_v55 = vsel %vm200_vm5, %v322_v52, %v298_v29 }
 0x107   :  { %v639_v31 = vmul.f32 %v638_v37, %v634_v32  ;;  %v646_v40 = vmul.f32 %v645_v49, %v634_v32  ;;  %v325_v56 = vsel %vm1203_vm6, 0, %v323_v55 }
 0x108   :  { %vm301_vm14 = vcmp.lt.s32.totalorder %v300_v50, 0  ;;  %v302_v13 = vsub.s32 0, %v300_v50  ;;  %v342_v5 = vand.u32 3, %v325_v56 }
 0x109   :  { %v640_v22 = vadd.f32 1.0, %v639_v31  ;;  %v647_v19 = vadd.f32 1.0, %v646_v40 }
 0x10a   :  { %v303_v23 = vsel %vm301_vm14, %v302_v13, %v300_v50  ;;  %vm344_vm7 = vcmp.eq.s32.totalorder %v342_v5, 0  ;;  %vm347_vm8 = vcmp.eq.s32.totalorder %v342_v5, 2  ;;  %vm343_vm9 = vcmp.lt.s32.totalorder %v342_v5, 2 }
 0x10b   :  { %v648_v46 = vmul.f32 %v647_v19, %v632_v2  ;;  %v656_v47 = vxor.u32 2147483648, %v640_v22  ;;  %v304_v58 = vclz %v303_v23 }
 0x10d   :  { %v653_v25 = vxor.u32 2147483648, %v648_v46  ;;  %v657_v41 = vsel %vm655_vm0, %v656_v47, %v648_v46  ;;  %v687_v15 = vadd.s32 4294967294, %v304_v58 }
 0x10f   :  { %v654_v4 = vsel %vm652_vm15, %v640_v22, %v653_v25  ;;  %vm688_vm3 = vcmp.lt.s32.totalorder %v687_v15, 0 }
 0x110   :  { %v658_v57 = vsel %vm651_vm1, %v654_v4, %v657_v41  ;;  %v307_v42 = vsel %vm688_vm3, 0, %v687_v15 }
 0x111   :  { %v659_v38 = vsel %vm649_vm2, nan, %v658_v57  ;;  %v308_v17 = vsub.s32 32, %v307_v42  ;;  %v312_v43 = vsub.s32 4294967266, %v307_v42  ;;  %v309_v21 = vshll.u32 %v300_v50, %v307_v42 }
 0x112   :  { %664 = vst.msk [vmem:[#allocation2 + $0x18] sm:$0xff] %vm660_vm4, %v659_v38 }
 0x113   :  { %v310_v63 = vshrl.u32 %v292_v59, %v308_v17  ;;  %v313_v16 = vadd.s32 127, %v312_v43 }
 0x115   :  { %v311_v45 = vor.u32 %v310_v63, %v309_v21  ;;  %v314_v54 = vshll.u32 %v313_v16, 23 }
 0x117   :  { %v315_v48 = vor.u32 4788187, %v314_v54  ;;  %v318_v33 = vcvt.s32.f32 %v311_v45 }
 0x119   :  { %v316_v51 = vand.u32 2147483647, %v315_v48 }
 0x11b   :  { %v319_v30 = vmul.f32 %v318_v33, %v316_v51 }
 0x11d   :  { %v320_v9 = vxor.u32 2147483648, %v319_v30 }
 0x11f   :  { %v321_v24 = vsel %vm200_vm5, %v320_v9, %v319_v30 }
 0x120   :  { %v324_v44 = vsel %vm1203_vm6, %v1007_v62, %v321_v24 }
 0x121   :  { %v326_v36 = vmul.f32 %v324_v44, %v324_v44 }
 0x123   :  { %v327_v2 = vmul.f32 -0.001358992, %v326_v36  ;;  %v334_v12 = vmul.f32 -0.00019511016, %v326_v36 }
 0x125   :  { %v328_v0 = vadd.f32 0.041655596, %v327_v2  ;;  %v335_v32 = vadd.f32 0.008332121, %v334_v12 }
 0x127   :  { %v329_v20 = vmul.f32 %v328_v0, %v326_v36  ;;  %v336_v1 = vmul.f32 %v335_v32, %v326_v36 }
 0x129   :  { %v330_v11 = vadd.f32 -0.4999988, %v329_v20  ;;  %v337_v34 = vadd.f32 -0.16666654, %v336_v1 }
 0x12b   :  { %v331_v8 = vmul.f32 %v330_v11, %v326_v36  ;;  %v338_v6 = vmul.f32 %v337_v34, %v326_v36 }
 0x12d   :  { %v332_v39 = vadd.f32 1.0, %v331_v8  ;;  %v339_v27 = vadd.f32 1.0, %v338_v6 }
 0x12f   :  { %v340_v7 = vmul.f32 %v339_v27, %v324_v44  ;;  %v348_v3 = vxor.u32 2147483648, %v332_v39 }
 0x131   :  { %v345_v26 = vxor.u32 2147483648, %v340_v7  ;;  %v349_v14 = vsel %vm347_vm8, %v348_v3, %v340_v7 }
 0x133   :  { %v346_v18 = vsel %vm344_vm7, %v332_v39, %v345_v26 }
 0x134   :  { %v350_v35 = vsel %vm343_vm9, %v346_v18, %v349_v14 }
 0x135   :  { %v351_v37 = vsel %vm341_vm10, nan, %v350_v35 }
 0x136   :  { %662 = vst.msk [vmem:[#allocation2 + $0x8] sm:$0xff] %vm660_vm4, %v351_v37 }
 0x137   :  { %677 = dma.vmem_to_hbm [thread:$0]  %s670_s1, 512, %s672_s21, [#allocation3], %s742_s22, %s742_s22, %s743_s23  }
 0x138   :  { %732 = dma.done.wait [#allocation3], 512  }
 0x139   :  { %733 = vsyncadd [#allocation3], 4294966784 }
 0x13a   :  { %682 = vsyncpa [#allocation3], 1 }

</bundles_post_ra>
